<compile_context>
chip_gen: v7x
topology: tpu7x:2x2x1
jax: 0.10.0
libtpu: 0.0.40
codegen_flags: <defaults>
</compile_context>

<pallas_src>
import functools

import jax
import jax.numpy as jnp
from jax.experimental import pallas as pl
from jax.experimental.pallas import tpu as pltpu

LANE = 128      # vreg lane width    -> pad feature (last) dims to this
SUBLANE = 8     # vreg sublane count -> pad node (second-to-last) dims to this


def _round_up(x, m):
    return ((x + m - 1) // m) * m


def _pad_to(x, shape):
    return jnp.pad(x, [(0, t - s) for s, t in zip(x.shape, shape)])


# ---------------------------------------------------------------------------
# Fused kernel: ALL relations targeting one destination node type, one layer.
#   grid = (num_relations,)        (accumulation axis -> "arbitrary")
#   out = sum_r [ X_dst @ W_self[r] + (A_norm[r] @ X_src[r]) @ W_neigh[r] + b[r] ]
# with the inter-layer ReLU optionally fused into the final step.
# ---------------------------------------------------------------------------
def _hetero_sage_kernel(a_ref, xs_ref, xd_ref, ws_ref, wn_ref, b_ref,
                        o_ref, acc_ref, *, apply_relu):
    r = pl.program_id(0)

    @pl.when(r == 0)
    def _():
        acc_ref[...] = jnp.zeros_like(acc_ref)

    # Mean-aggregated neighbor features: adjacency rows were pre-normalized on
    # the host, so this is a single MXU contraction (no row-sum / divide here).
    agg = jnp.dot(a_ref[...], xs_ref[...], preferred_element_type=jnp.float32)

    acc_ref[...] += (
        jnp.dot(xd_ref[...], ws_ref[...], preferred_element_type=jnp.float32)
        + jnp.dot(agg, wn_ref[...], preferred_element_type=jnp.float32)
        + b_ref[...])                                   # bias broadcast [1, Fo]

    @pl.when(r == pl.num_programs(0) - 1)
    def _():
        res = acc_ref[...]
        if apply_relu:                                  # fused inter-layer ReLU
            res = jnp.maximum(res, 0.0)
        o_ref[...] = res.astype(o_ref.dtype)


def fused_sage_dst(a_stack, xs_stack, x_dst, ws_stack, wn_stack, b_stack, *,
                   apply_relu):
    """All relations for one destination type, one layer, in one pallas_call."""
    n_rel, n_dst, n_src = a_stack.shape
    f_in = xs_stack.shape[2]
    f_out = ws_stack.shape[2]

    kernel = functools.partial(_hetero_sage_kernel, apply_relu=apply_relu)
    return pl.pallas_call(
        kernel,
        out_shape=jax.ShapeDtypeStruct((n_dst, f_out), jnp.float32),
        grid=(n_rel,),
        in_specs=[
            pl.BlockSpec((None, n_dst, n_src), lambda r: (r, 0, 0)),   # A_norm[r]
            pl.BlockSpec((None, n_src, f_in), lambda r: (r, 0, 0)),    # X_src[r]
            pl.BlockSpec((n_dst, f_in), lambda r: (0, 0)),             # X_dst
            pl.BlockSpec((None, f_in, f_out), lambda r: (r, 0, 0)),    # W_self[r]
            pl.BlockSpec((None, f_in, f_out), lambda r: (r, 0, 0)),    # W_neigh[r]
            pl.BlockSpec((None, 1, f_out), lambda r: (r, 0, 0)),       # bias[r]
        ],
        out_specs=pl.BlockSpec((n_dst, f_out), lambda r: (0, 0)),      # resident
        scratch_shapes=[pltpu.VMEM((n_dst, f_out), jnp.float32)],
        compiler_params=pltpu.CompilerParams(
            dimension_semantics=("arbitrary",)),   # relation axis is a reduction
    )(a_stack, xs_stack, x_dst, ws_stack, wn_stack, b_stack)


# ---------------------------------------------------------------------------
# Graph preparation (done once; adjacency is static and reused by both layers).
# ---------------------------------------------------------------------------
def prepare_graph(relations, sizes):
    """relations: dict rel -> (src_type, dst_type, adj [N_dst, N_src] of {0,1})
       sizes:     dict node_type -> node count
       Returns (prepared, padded_sizes):
         prepared: dict dst_type -> {rels: [(rel, src_type), ...],
                                     a_stack: [R, Nd_pad, Ns_pad], ns_pad: int}
    """
    padded_sizes = {t: _round_up(n, SUBLANE) for t, n in sizes.items()}
    by_dst = {}
    for rel, (src_t, dst_t, adj) in relations.items():
        by_dst.setdefault(dst_t, []).append((rel, src_t, adj))

    prepared = {}
    for dst_t, items in by_dst.items():
        nd_pad = padded_sizes[dst_t]
        ns_pad = max(padded_sizes[src_t] for _, src_t, _ in items)
        a_list, rel_list = [], []
        for rel, src_t, adj in items:
            deg = jnp.sum(adj, axis=1, keepdims=True)
            a_norm = adj / jnp.maximum(deg, 1.0)   # exact DGL 'mean' (deg 0 -> 0)
            a_list.append(_pad_to(a_norm, (nd_pad, ns_pad)))
            rel_list.append((rel, src_t))
        prepared[dst_t] = dict(rels=rel_list, ns_pad=ns_pad,
                               a_stack=jnp.stack(a_list, axis=0))
    return prepared, padded_sizes


def hetero_layer(prepared, feats_pad, params, f_in_pad, f_out_pad, apply_relu):
    """One HeteroGraphConv(aggregate='sum') layer.  feats_pad values are
    [N_pad, f_in_pad]; returns dict dst_type -> [N_pad, f_out_pad]."""
    outs = {}
    for dst_t, info in prepared.items():
        ns_pad = info["ns_pad"]
        xs_l, ws_l, wn_l, b_l = [], [], [], []
        for rel, src_t in info["rels"]:
            w_self, w_neigh, bias = params[rel]
            xs_l.append(_pad_to(feats_pad[src_t], (ns_pad, f_in_pad)))
            ws_l.append(_pad_to(w_self, (f_in_pad, f_out_pad)))
            wn_l.append(_pad_to(w_neigh, (f_in_pad, f_out_pad)))
            b_l.append(_pad_to(bias.reshape(1, -1), (1, f_out_pad)))
        outs[dst_t] = fused_sage_dst(
            info["a_stack"], jnp.stack(xs_l, 0), feats_pad[dst_t],
            jnp.stack(ws_l, 0), jnp.stack(wn_l, 0), jnp.stack(b_l, 0),
            apply_relu=apply_relu)
    return outs


def rsage_conv_forward(prepared, padded_sizes, sizes, inputs, params1, params2,
                       hid_feats, out_feats):
    f_in = next(iter(inputs.values())).shape[1]
    f_in_pad = _round_up(f_in, LANE)
    hid_pad = _round_up(hid_feats, LANE)
    out_pad = _round_up(out_feats, LANE)

    feats0 = {t: _pad_to(x, (padded_sizes[t], f_in_pad)) for t, x in inputs.items()}
    # conv1 + fused ReLU.  Padded hidden columns are exactly zero (zero-padded
    # weights/bias), so h feeds conv2 directly with no slicing in between.
    h = hetero_layer(prepared, feats0, params1, f_in_pad, hid_pad, apply_relu=True)
    out = hetero_layer(prepared, h, params2, hid_pad, out_pad, apply_relu=False)
    return {t: y[:sizes[t], :out_feats] for t, y in out.items()}


# ---------------------------------------------------------------------------
# Pure-JAX reference (unpadded, per-relation) for correctness checking.
# ---------------------------------------------------------------------------
def rsage_reference(relations, inputs, params1, params2):
    def layer(feats, params):
        outs = {}
        for rel, (src_t, dst_t, adj) in relations.items():
            w_self, w_neigh, bias = params[rel]
            deg = jnp.maximum(adj.sum(axis=1, keepdims=True), 1.0)
            agg = (adj @ feats[src_t]) / deg
            y = feats[dst_t] @ w_self + agg @ w_neigh + bias
            outs[dst_t] = y if dst_t not in outs else outs[dst_t] + y
        return outs
    h = layer(inputs, params1)
    h = {k: jax.nn.relu(v) for k, v in h.items()}
    return layer(h, params2)


# ---------------------------------------------------------------------------
# Deterministic parameter / input construction.
# ---------------------------------------------------------------------------
def make_sage_params(key, f_in, f_out):
    k1, k2 = jax.random.split(key)
    scale = 1.0 / jnp.sqrt(jnp.float32(f_in))
    w_self = jax.random.normal(k1, (f_in, f_out), jnp.float32) * scale
    w_neigh = jax.random.normal(k2, (f_in, f_out), jnp.float32) * scale
    bias = jnp.zeros((f_out,), jnp.float32)
    return w_self, w_neigh, bias


if __name__ == "__main__":
    key = jax.random.PRNGKey(0)

    # Small synthetic heterogeneous graph: 2 node types, 3 relations.
    N_USER, N_ITEM = 16, 16
    IN_FEATS, HID_FEATS, OUT_FEATS = 8, 16, 8
    rel_names = ["clicks", "clicked_by", "buys"]
    rel_meta = {
        "clicks":     ("user", "item"),
        "clicked_by": ("item", "user"),
        "buys":       ("user", "item"),
    }
    sizes = {"user": N_USER, "item": N_ITEM}

    keys = jax.random.split(key, 16)
    # adjacency per relation: [N_dst, N_src], float32 0/1
    relations = {}
    for i, rel in enumerate(rel_names):
        src_t, dst_t = rel_meta[rel]
        adj = jax.random.bernoulli(keys[i], p=0.3,
                                   shape=(sizes[dst_t], sizes[src_t])).astype(jnp.float32)
        relations[rel] = (src_t, dst_t, adj)

    # node input features
    inputs = {
        "user": jax.random.normal(keys[4], (N_USER, IN_FEATS), jnp.float32),
        "item": jax.random.normal(keys[5], (N_ITEM, IN_FEATS), jnp.float32),
    }

    # per-relation SAGEConv parameters for both layers
    params1 = {rel: make_sage_params(keys[6 + i], IN_FEATS, HID_FEATS)
               for i, rel in enumerate(rel_names)}
    params2 = {rel: make_sage_params(keys[10 + i], HID_FEATS, OUT_FEATS)
               for i, rel in enumerate(rel_names)}

    # One-time graph prep (row-normalized, padded, stacked adjacencies).
    prepared, padded_sizes = prepare_graph(relations, sizes)

    out = rsage_conv_forward(prepared, padded_sizes, sizes, inputs,
                             params1, params2, HID_FEATS, OUT_FEATS)
    out = jax.tree_util.tree_map(jax.block_until_ready, out)

    assert out["user"].shape == (N_USER, OUT_FEATS)
    assert out["item"].shape == (N_ITEM, OUT_FEATS)

    # Correctness vs. pure-JAX reference (loose tolerance: TPU f32 matmul passes).
    ref = rsage_reference(relations, inputs, params1, params2)
    for t in out:
        assert jnp.allclose(out[t], ref[t], rtol=2e-2, atol=2e-2), f"mismatch for {t}"

    print("KERNEL_OK")
</pallas_src>

<mosaic_0001>
module attributes {stable_mosaic.version = 11 : i64} {
  func.func @_hetero_sage_kernel(%arg0: i32, %arg1: memref<1x16x16xf32, #tpu.memory_space<vmem>>, %arg2: memref<1x16x128xf32, #tpu.memory_space<vmem>>, %arg3: memref<16x128xf32, #tpu.memory_space<vmem>>, %arg4: memref<1x128x128xf32, #tpu.memory_space<vmem>>, %arg5: memref<1x128x128xf32, #tpu.memory_space<vmem>>, %arg6: memref<1x1x128xf32, #tpu.memory_space<vmem>>, %arg7: memref<16x128xf32, #tpu.memory_space<vmem>>, %arg8: memref<16x128xf32, #tpu.memory_space<vmem>>) attributes {dimension_semantics = [#tpu.dimension_semantics<arbitrary>], iteration_bounds = array<i64: 2>, scalar_prefetch = 0 : i64, scratch_operands = 1 : i64, tpu.core_type = #tpu.core_type<tc>, window_params = [{transform_indices = @transform_0, window_bounds = array<i64: 1, 16, 16>}, {transform_indices = @transform_1, window_bounds = array<i64: 1, 16, 128>}, {pipeline_mode = #tpu.pipeline_mode<synchronous>, transform_indices = @transform_2, window_bounds = array<i64: 16, 128>}, {transform_indices = @transform_3, window_bounds = array<i64: 1, 128, 128>}, {transform_indices = @transform_4, window_bounds = array<i64: 1, 128, 128>}, {transform_indices = @transform_5, window_bounds = array<i64: 1, 1, 128>}, {pipeline_mode = #tpu.pipeline_mode<synchronous>, transform_indices = @transform_6, window_bounds = array<i64: 16, 128>}]} {
    %c0_i32 = arith.constant 0 : i32
    %0 = arith.cmpi eq, %arg0, %c0_i32 : i32
    %1 = arith.extui %0 : i1 to i32
    %c0_i32_0 = arith.constant 0 : i32
    %2 = arith.cmpi ne, %1, %c0_i32_0 : i32
    scf.if %2 {
      %cst_24 = arith.constant 0.000000e+00 : f32
      %26 = vector.broadcast %cst_24 : f32 to vector<16x128xf32>
      %c0_25 = arith.constant 0 : index
      %c0_26 = arith.constant 0 : index
      %27 = vector.load %arg8[%c0_25, %c0_26] : memref<16x128xf32, #tpu.memory_space<vmem>>, vector<16x128xf32>
      tpu.vector_store %arg8[%c0_25, %c0_26], %26 {strides = array<i32>} : memref<16x128xf32, #tpu.memory_space<vmem>>, vector<16x128xf32>,
    } else {
    }
    %c0 = arith.constant 0 : index
    %c0_1 = arith.constant 0 : index
    %c0_2 = arith.constant 0 : index
    %3 = vector.load %arg1[%c0, %c0_1, %c0_2] : memref<1x16x16xf32, #tpu.memory_space<vmem>>, vector<1x16x16xf32>
    %4 = vector.shape_cast %3 : vector<1x16x16xf32> to vector<16x16xf32>
    %c0_3 = arith.constant 0 : index
    %c0_4 = arith.constant 0 : index
    %c0_5 = arith.constant 0 : index
    %5 = vector.load %arg2[%c0_3, %c0_4, %c0_5] : memref<1x16x128xf32, #tpu.memory_space<vmem>>, vector<1x16x128xf32>
    %6 = vector.shape_cast %5 : vector<1x16x128xf32> to vector<16x128xf32>
    %cst = arith.constant dense<0.000000e+00> : vector<16x128xf32>
    %7 = tpu.matmul %4, %6, %cst {dimension_numbers = #tpu.dot_dimension_numbers<[1], [0], [0], [1], [0, 0, 1, 1], [], []>} : vector<16x16xf32>, vector<16x128xf32>, vector<16x128xf32> -> vector<16x128xf32>
    %c0_6 = arith.constant 0 : index
    %c0_7 = arith.constant 0 : index
    %8 = vector.load %arg8[%c0_6, %c0_7] : memref<16x128xf32, #tpu.memory_space<vmem>>, vector<16x128xf32>
    %c0_8 = arith.constant 0 : index
    %c0_9 = arith.constant 0 : index
    %9 = vector.load %arg3[%c0_8, %c0_9] : memref<16x128xf32, #tpu.memory_space<vmem>>, vector<16x128xf32>
    %c0_10 = arith.constant 0 : index
    %c0_11 = arith.constant 0 : index
    %c0_12 = arith.constant 0 : index
    %10 = vector.load %arg4[%c0_10, %c0_11, %c0_12] : memref<1x128x128xf32, #tpu.memory_space<vmem>>, vector<1x128x128xf32>
    %11 = vector.shape_cast %10 : vector<1x128x128xf32> to vector<128x128xf32>
    %cst_13 = arith.constant dense<0.000000e+00> : vector<16x128xf32>
    %12 = tpu.matmul %9, %11, %cst_13 {dimension_numbers = #tpu.dot_dimension_numbers<[1], [0], [0], [1], [0, 0, 1, 1], [], []>} : vector<16x128xf32>, vector<128x128xf32>, vector<16x128xf32> -> vector<16x128xf32>
    %c0_14 = arith.constant 0 : index
    %c0_15 = arith.constant 0 : index
    %c0_16 = arith.constant 0 : index
    %13 = vector.load %arg5[%c0_14, %c0_15, %c0_16] : memref<1x128x128xf32, #tpu.memory_space<vmem>>, vector<1x128x128xf32>
    %14 = vector.shape_cast %13 : vector<1x128x128xf32> to vector<128x128xf32>
    %cst_17 = arith.constant dense<0.000000e+00> : vector<16x128xf32>
    %15 = tpu.matmul %7, %14, %cst_17 {dimension_numbers = #tpu.dot_dimension_numbers<[1], [0], [0], [1], [0, 0, 1, 1], [], []>} : vector<16x128xf32>, vector<128x128xf32>, vector<16x128xf32> -> vector<16x128xf32>
    %16 = arith.addf %12, %15 : vector<16x128xf32>
    %c0_18 = arith.constant 0 : index
    %c0_19 = arith.constant 0 : index
    %c0_20 = arith.constant 0 : index
    %17 = vector.load %arg6[%c0_18, %c0_19, %c0_20] : memref<1x1x128xf32, #tpu.memory_space<vmem>>, vector<1x1x128xf32>
    %18 = vector.shape_cast %17 : vector<1x1x128xf32> to vector<1x128xf32>
    %19 = vector.broadcast %18 : vector<1x128xf32> to vector<16x128xf32>
    %20 = arith.addf %16, %19 : vector<16x128xf32>
    %21 = arith.addf %8, %20 : vector<16x128xf32>
    %c0_21 = arith.constant 0 : index
    %c0_22 = arith.constant 0 : index
    %22 = vector.load %arg8[%c0_21, %c0_22] : memref<16x128xf32, #tpu.memory_space<vmem>>, vector<16x128xf32>
    tpu.vector_store %arg8[%c0_21, %c0_22], %21 {strides = array<i32>} : memref<16x128xf32, #tpu.memory_space<vmem>>, vector<16x128xf32>,
    %c1_i32 = arith.constant 1 : i32
    %23 = arith.cmpi eq, %arg0, %c1_i32 : i32
    %24 = arith.extui %23 : i1 to i32
    %c0_i32_23 = arith.constant 0 : i32
    %25 = arith.cmpi ne, %24, %c0_i32_23 : i32
    scf.if %25 {
      %c0_24 = arith.constant 0 : index
      %c0_25 = arith.constant 0 : index
      %26 = vector.load %arg8[%c0_24, %c0_25] : memref<16x128xf32, #tpu.memory_space<vmem>>, vector<16x128xf32>
      %cst_26 = arith.constant 0.000000e+00 : f32
      %27 = vector.broadcast %cst_26 : f32 to vector<16x128xf32>
      %28 = arith.maximumf %26, %27 : vector<16x128xf32>
      %c0_27 = arith.constant 0 : index
      %c0_28 = arith.constant 0 : index
      %29 = vector.load %arg7[%c0_27, %c0_28] : memref<16x128xf32, #tpu.memory_space<vmem>>, vector<16x128xf32>
      tpu.vector_store %arg7[%c0_27, %c0_28], %28 {strides = array<i32>} : memref<16x128xf32, #tpu.memory_space<vmem>>, vector<16x128xf32>,
    } else {
    }
    return
  }
  func.func @transform_0(%arg0: i32) -> (i32, i32, i32) {
    %c0_i32 = arith.constant 0 : i32
    %c0_i32_0 = arith.constant 0 : i32
    %c0_i32_1 = arith.constant 0 : i32
    return %arg0, %c0_i32, %c0_i32_0 : i32, i32, i32
  }
  func.func @transform_1(%arg0: i32) -> (i32, i32, i32) {
    %c0_i32 = arith.constant 0 : i32
    %c0_i32_0 = arith.constant 0 : i32
    %c0_i32_1 = arith.constant 0 : i32
    return %arg0, %c0_i32, %c0_i32_0 : i32, i32, i32
  }
  func.func @transform_2(%arg0: i32) -> (i32, i32) {
    %c0_i32 = arith.constant 0 : i32
    %c0_i32_0 = arith.constant 0 : i32
    %c0_i32_1 = arith.constant 0 : i32
    return %c0_i32, %c0_i32_0 : i32, i32
  }
  func.func @transform_3(%arg0: i32) -> (i32, i32, i32) {
    %c0_i32 = arith.constant 0 : i32
    %c0_i32_0 = arith.constant 0 : i32
    %c0_i32_1 = arith.constant 0 : i32
    return %arg0, %c0_i32, %c0_i32_0 : i32, i32, i32
  }
  func.func @transform_4(%arg0: i32) -> (i32, i32, i32) {
    %c0_i32 = arith.constant 0 : i32
    %c0_i32_0 = arith.constant 0 : i32
    %c0_i32_1 = arith.constant 0 : i32
    return %arg0, %c0_i32, %c0_i32_0 : i32, i32, i32
  }
  func.func @transform_5(%arg0: i32) -> (i32, i32, i32) {
    %c0_i32 = arith.constant 0 : i32
    %c0_i32_0 = arith.constant 0 : i32
    %c0_i32_1 = arith.constant 0 : i32
    return %arg0, %c0_i32, %c0_i32_0 : i32, i32, i32
  }
  func.func @transform_6(%arg0: i32) -> (i32, i32) {
    %c0_i32 = arith.constant 0 : i32
    %c0_i32_0 = arith.constant 0 : i32
    %c0_i32_1 = arith.constant 0 : i32
    return %c0_i32, %c0_i32_0 : i32, i32
  }
}

</mosaic_0001>

<bundles_post_ra>
// kernel: tpu_custom_call.1
= control target key start
LH: loop header
LB: loop body
LE: loop exit
PB: predicated region body
PF: predicated region fallthrough
CT: control target
= control target key end

     0   :  { %s1787_s0 = inlined_call_operand.hbm [shape: f32[2,16,16], index: 0, kind: input, shape index: {}]   ;;  %s1788_s1 = inlined_call_operand.hbm [shape: f32[2,16,128], index: 1, kind: input, shape index: {}]   ;;  %s1789_s2 = inlined_call_operand.hbm [shape: f32[16,128], index: 2, kind: input, shape index: {}]   ;;  %s1790_s3 = inlined_call_operand.hbm [shape: f32[2,128,128], index: 3, kind: input, shape index: {}]   ;;  %s1791_s4 = inlined_call_operand.hbm [shape: f32[2,128,128], index: 4, kind: input, shape index: {}]   ;;  %s1792_s5 = inlined_call_operand.vmem [shape: f32[2,1,128], index: 5, kind: input, shape index: {}]   ;;  %s1793_s6 = inlined_call_operand.hbm [shape: f32[16,128], index: 6, kind: output, shape index: {}]  }
   0x1   :  { %1806 = sst [smem:[#allocation20_spill]] %s1787_s0 }
   0x2   :  { %1807 = sst [smem:[#allocation21_spill]] %s1789_s2 }
   0x3   :  { %1808 = sst [smem:[#allocation22_spill]] %s1790_s3 }
   0x4   :  { %11 = vsyncpa [#allocation4], 0 }
   0x5   :  { %13 = vsyncpa [#allocation4 + $0x1], 0 }
   0x6   :  { %14 = vsyncpa [#allocation7], 0 }
   0x7   :  { %16 = vsyncpa [#allocation7 + $0x1], 0 }
   0x8   :  { %17 = vsyncpa [#allocation10], 0 }
   0x9   :  { %19 = vsyncpa [#allocation10 + $0x1], 0 }
   0xa   :  { %20 = vsyncpa [#allocation5], 0  ;;  %s1418_s21 = smov 0   ;;  %s1420_s22 = smov 0  }
   0xb   :  { %s1422_s23 = smov 0   ;;  %s1424_s24 = smov 0  }
   0xc LB: > { %1809 = sst [smem:[#allocation18_spill]] %s1366_s23  ;;  %s1437_s25 = sadd.s32 4294967295, %s1370_s24   ;;  %s1370_s24 = sphi %s1424_s24, %s1836_s24   ;;  %s1366_s23 = sphi %s1422_s23, %s1833_s23   ;;  %s1362_s22 = sphi %s1420_s22, %s1835_s22   ;;  %s1358_s21 = sphi %s1418_s21, %s1834_s21  }
   0xd   : > { %s1440_s26 = sadd.s32 1, %s1370_s24   ;;  %s33_s28 = sadd.s32 1, %s1366_s23 }
   0xe   : > { %s30_s27 = ssub.s32 %s1370_s24, %s1440_s26  ;;  %p40_p1 = scmp.ne.s32.totalorder %s1366_s23, %s1362_s22 }
   0xf   : > { %p31_p0 = scmp.eq.s32.totalorder %s30_s27, 0  ;;  %p41_p2 = scmp.eq.s32.totalorder %s1370_s24, 0 }
  0x10   : > { %p46_p3 = scmp.ne.s32.totalorder %s1362_s22, %s1358_s21  ;;  %p1794_p5 = scmp.eq.s32.totalorder %s1437_s25, 0 }
  0x11   : > { %s1450_s29 = scalar_select %p31_p0, %s1366_s23, %s33_s28  }
  0x12   : > { %p1452_p4 = por %p41_p2, %p40_p1  ;;  %p848_p6 = scmp.ge.s32.totalorder %s1370_s24, 1 }
  0x13   : > { %1810 = sst [smem:[#allocation19_spill]] %s1450_s29  ;;  %p203_p7 = scmp.lt.s32.totalorder %s1370_s24, 3 }
  0x14   : > { %p1461_p8 = por %p1794_p5, %p46_p3  ;;  %s1372_s9 = smov [#allocation8]  }
  0x15   : > { %p1466_p10 = pnand %p848_p6, %p203_p7  ;;  %s215_s10 = sshll.u32 %s1372_s9, 4  ;;  %s216_s10 = int_to_ptr.vmem [resolvable:$true] %s215_s10 }
  0x16   : > { %s1812_s7 = scalar_select %p1461_p8, 1, 0 }
  0x17   : > { %s1813_s8 = scalar_select %p1466_p10, 1, 0 }
  0x18   : > { %p1085_p11 = pneg %p1466_p10  ;;  %p1103_p13 = scmp.lt.s32.totalorder %s1370_s24, 2 }
  0x19   : > { %s1480_s12 = sand.u32 1, %s1366_s23   ;;  %s1799_s13 = sand.u32 1, %s1370_s24  }
  0x1a   : > { %p1474_p12 = pnand %p1085_p11, %p1794_p5  ;;  %p1485_p0 = pnand %p1103_p13, %p1452_p4 }
  0x1b   : > { %s1816_s2 = sld [smem:[#allocation21_spill]] }
  0x1c   : > { %s1815_s14 = scalar_select %p1485_p0, 1, 0 }
  0x1d   : > { %p1148_p2 = pneg %p1474_p12 }
  0x21   : > { %s1146_s17 = scalar_lea.hbm %s1816_s2, 256 }
  0x22   : > { %p1147_p1 = scmp.ne.s32.totalorder %s1816_s2, %s1146_s17  ;;  %p1153_p7 = scmp.lt.u32.totalorder %s1146_s17, %s1816_s2 }
  0x24   : > { %p1149_p3 = pnand %p1148_p2, %p1147_p1 }
  0x26   : > { %p1150_p6 = pneg %p1149_p3 }
  0x28   : > { %p1155_p4 = pnand %p1153_p7, %p1150_p6 }
  0x2a   : > { %1158 = shalt.err (!%p1155_p4)
}
  0x2b   : > { %s1159_s27 = scalar_lea.vmem %s216_s10, 256  ;;  %p1167_p5 = scmp.lt.s32.totalorder %s216_s10, %s216_s10 }
  0x2c   : > { %p1160_p11 = scmp.ne.s32.totalorder %s216_s10, %s1159_s27  ;;  %p1168_p8 = scmp.lt.s32.totalorder %s1159_s27, %s1159_s27 }
  0x2e   : > { %p1162_p13 = pnand %p1160_p11, %p1148_p2  ;;  %p1169_p10 = por %p1168_p8, %p1167_p5 }
  0x30   : > { %p1163_p9 = pneg %p1162_p13 }
  0x32   : > { %p1170_p0 = pnand %p1169_p10, %p1163_p9 }
  0x34   : > { %1173 = shalt.err (!%p1170_p0)
}
  0x35   : > { %s1801_s28 = smov 128   ;;  %s1803_s30 = smov 8  }
  0x36   : > { %1088 = dma.hbm_to_vmem [thread:$0]  (!%p1474_p12), %s1816_s2, 256, %s216_s10, [#allocation7], %s1801_s28, %s1801_s28, %s1803_s30  }
  0x37   : > { %s1798_s16 = sshll.u32 %s1480_s12, 7  ;;  %s880_s17 = sshll.u32 %s1370_s24, 11 }
  0x38   : > { %s1817_s3 = sld [smem:[#allocation22_spill]]  ;;  %s275_s11 = scalar_lea.vmem [#allocation9], %s1798_s16 }
  0x39   : > { %s282_s21 = sshll.u32 %s275_s11, 4  ;;  %s1523_s27 = scalar_lea.sflag [#allocation10], %s1799_s13  ;;  %s1519_s21 = int_to_ptr.vmem [resolvable:$true] %s282_s21 }
  0x3a   : > { %p1818_p8 = scmp.ne.s32.totalorder %s1815_s14, 0 }
  0x3c   : > { %p1529_p9 = pneg %p1818_p8 }
  0x3e   : > { %s1515_s20 = scalar_lea.hbm %s1817_s3, %s880_s17  ;;  %s1179_s19 = scalar_lea.hbm %s1817_s3, 4096 }
  0x3f   : > { %s1174_s10 = scalar_lea.hbm %s1515_s20, 2048  ;;  %p1180_p0 = scmp.lt.u32.totalorder %s1515_s20, %s1817_s3 }
  0x40   : > { %p1175_p5 = scmp.ne.s32.totalorder %s1515_s20, %s1174_s10  ;;  %p1181_p1 = scmp.lt.u32.totalorder %s1179_s19, %s1174_s10 }
  0x41   : > { %p1183_p3 = scmp.lt.u32.totalorder %s1174_s10, %s1515_s20 }
  0x42   : > { %p1177_p10 = pnand %p1529_p9, %p1175_p5  ;;  %p1182_p2 = por %p1181_p1, %p1180_p0 }
  0x44   : > { %p1178_p12 = pneg %p1177_p10  ;;  %p1184_p6 = por %p1183_p3, %p1182_p2 }
  0x46   : > { %p1185_p7 = pnand %p1184_p6, %p1178_p12 }
  0x48   : > { %1188 = shalt.err (!%p1185_p7)
}
  0x49   : > { %s1189_s13 = scalar_lea.vmem %s1519_s21, 2048  ;;  %s1375_s15 = smov [#allocation9]  }
  0x4a   : > { %p1190_p4 = scmp.ne.s32.totalorder %s1519_s21, %s1189_s13  ;;  %s1194_s18 = sshll.u32 %s1375_s15, 4  ;;  %s1195_s18 = int_to_ptr.vmem [resolvable:$false] %s1194_s18 }
  0x4b   : > { %s1196_s16 = scalar_lea.vmem %s1195_s18, 4096  ;;  %p1197_p5 = scmp.lt.s32.totalorder %s1519_s21, %s1195_s18 }
  0x4c   : > { %p1192_p11 = pnand %p1190_p4, %p1529_p9  ;;  %p1198_p10 = scmp.lt.s32.totalorder %s1196_s16, %s1189_s13 }
  0x4e   : > { %p1193_p13 = pneg %p1192_p11  ;;  %p1199_p0 = por %p1198_p10, %p1197_p5 }
  0x50   : > { %p1200_p1 = pnand %p1199_p0, %p1193_p13 }
  0x52   : > { %1203 = shalt.err (!%p1200_p1)
}
  0x53   : > { %1098 = dma.hbm_to_vmem [thread:$0]  (!%p1818_p8), %s1515_s20, 2048, %s1519_s21, %s1523_s27, %s1801_s28, %s1801_s28, %s1803_s30  }
  0x54   : > { %s1561_s19 = scalar_lea.hbm %s1791_s4, %s880_s17  ;;  %s1820_s11 = sshll.u32 %s1480_s12, 7 }
  0x55   : > { %s1565_s15 = scalar_lea.vmem [#allocation11], %s1820_s11  ;;  %s1805_s16 = sshll.u32 %s1480_s12, 4 }
  0x56   : > { %s878_s2 = sshll.u32 %s1370_s24, 8  ;;  %s1821_s0 = sld [smem:[#allocation20_spill]] }
  0x57   : > { %s233_s20 = scalar_lea.vmem [#allocation3], %s1805_s16  ;;  %s1582_s10 = scalar_lea.hbm %s1788_s1, %s878_s2 }
  0x58   : > { %s240_s17 = sshll.u32 %s233_s20, 4  ;;  %s230_s11 = scalar_lea.sflag [#allocation4], %s1480_s12  ;;  %s1577_s17 = int_to_ptr.vmem [resolvable:$true] %s240_s17 }
  0x5c   : > { %s1573_s23 = scalar_lea.hbm %s1821_s0, %s878_s2  ;;  %s1209_s28 = scalar_lea.hbm %s1821_s0, 512 }
  0x5d   : > { %s1204_s18 = scalar_lea.hbm %s1573_s23, 256  ;;  %p1210_p6 = scmp.lt.u32.totalorder %s1573_s23, %s1821_s0 }
  0x5e   : > { %p1205_p12 = scmp.ne.s32.totalorder %s1573_s23, %s1204_s18  ;;  %p1211_p7 = scmp.lt.u32.totalorder %s1209_s28, %s1204_s18 }
  0x5f   : > { %p1213_p11 = scmp.lt.u32.totalorder %s1204_s18, %s1573_s23 }
  0x60   : > { %p1207_p2 = pnand %p1205_p12, %p1529_p9  ;;  %p1212_p4 = por %p1211_p7, %p1210_p6 }
  0x62   : > { %p1208_p3 = pneg %p1207_p2  ;;  %p1214_p13 = por %p1213_p11, %p1212_p4 }
  0x64   : > { %p1215_p5 = pnand %p1214_p13, %p1208_p3 }
  0x66   : > { %1218 = shalt.err (!%p1215_p5)
}
  0x67   : > { %s1219_s2 = scalar_lea.vmem %s1577_s17, 256  ;;  %s1376_s20 = smov [#allocation3]  }
  0x68   : > { %p1220_p10 = scmp.ne.s32.totalorder %s1577_s17, %s1219_s2  ;;  %s1224_s21 = sshll.u32 %s1376_s20, 4  ;;  %s1225_s21 = int_to_ptr.vmem [resolvable:$false] %s1224_s21 }
  0x69   : > { %s1226_s30 = scalar_lea.vmem %s1225_s21, 512  ;;  %p1227_p12 = scmp.lt.s32.totalorder %s1577_s17, %s1225_s21 }
  0x6a   : > { %p1222_p0 = pnand %p1220_p10, %p1529_p9  ;;  %p1228_p2 = scmp.lt.s32.totalorder %s1226_s30, %s1219_s2 }
  0x6c   : > { %p1223_p1 = pneg %p1222_p0  ;;  %p1229_p6 = por %p1228_p2, %p1227_p12 }
  0x6e   : > { %p1230_p7 = pnand %p1229_p6, %p1223_p1 }
  0x70   : > { %1233 = shalt.err (!%p1230_p7)
}
  0x71   : > { %s1822_s28 = smov 8   ;;  %s1823_s18 = smov 128  }
  0x72   : > { %1092 = dma.hbm_to_vmem [thread:$0]  (!%p1818_p8), %s1573_s23, 256, %s1577_s17, %s230_s11, %s1823_s18, %s1823_s18, %s1822_s28  }
  0x73   : > { %s1824_s16 = sshll.u32 %s1565_s15, 4  ;;  %s1825_s13 = sshll.u32 %s1480_s12, 4  ;;  %s1613_s16 = int_to_ptr.vmem [resolvable:$true] %s1824_s16 }
  0x74   : > { %s254_s3 = scalar_lea.vmem [#allocation6], %s1825_s13  ;;  %s1826_s2 = sand.u32 1, %s1370_s24  }
  0x75   : > { %s261_s29 = sshll.u32 %s254_s3, 4  ;;  %s1621_s20 = scalar_lea.sflag [#allocation7], %s1826_s2  ;;  %s1617_s29 = int_to_ptr.vmem [resolvable:$true] %s261_s29 }
  0x76   : > { %s1234_s21 = scalar_lea.hbm %s1582_s10, 256  ;;  %s1239_s23 = scalar_lea.hbm %s1788_s1, 512 }
  0x77   : > { %p1235_p3 = scmp.ne.s32.totalorder %s1582_s10, %s1234_s21  ;;  %p1240_p13 = scmp.lt.u32.totalorder %s1582_s10, %s1788_s1 }
  0x78   : > { %p1241_p5 = scmp.lt.u32.totalorder %s1239_s23, %s1234_s21  ;;  %p1243_p0 = scmp.lt.u32.totalorder %s1234_s21, %s1582_s10 }
  0x79   : > { %p1237_p4 = pnand %p1235_p3, %p1529_p9 }
  0x7a   : > { %p1242_p10 = por %p1241_p5, %p1240_p13 }
  0x7b   : > { %p1238_p11 = pneg %p1237_p4 }
  0x7c   : > { %p1244_p1 = por %p1243_p0, %p1242_p10 }
  0x7e   : > { %p1245_p12 = pnand %p1244_p1, %p1238_p11 }
  0x80   : > { %1248 = shalt.err (!%p1245_p12)
}
  0x81   : > { %s1249_s24 = scalar_lea.vmem %s1617_s29, 256  ;;  %s1377_s0 = smov [#allocation6]  }
  0x82   : > { %p1250_p2 = scmp.ne.s32.totalorder %s1617_s29, %s1249_s24  ;;  %s1254_s12 = sshll.u32 %s1377_s0, 4  ;;  %s1255_s12 = int_to_ptr.vmem [resolvable:$false] %s1254_s12 }
  0x83   : > { %s1256_s11 = scalar_lea.vmem %s1255_s12, 512  ;;  %p1257_p3 = scmp.lt.s32.totalorder %s1617_s29, %s1255_s12 }
  0x84   : > { %p1252_p6 = pnand %p1250_p2, %p1529_p9  ;;  %p1258_p4 = scmp.lt.s32.totalorder %s1256_s11, %s1249_s24 }
  0x86   : > { %p1253_p7 = pneg %p1252_p6  ;;  %p1259_p13 = por %p1258_p4, %p1257_p3 }
  0x88   : > { %p1260_p5 = pnand %p1259_p13, %p1253_p7 }
  0x8a   : > { %1263 = shalt.err (!%p1260_p5)
}
  0x8b   : > { %1095 = dma.hbm_to_vmem [thread:$0]  (!%p1818_p8), %s1582_s10, 256, %s1617_s29, %s1621_s20, %s1823_s18, %s1823_s18, %s1822_s28  }
  0x8c   : > { %s1264_s13 = scalar_lea.hbm %s1561_s19, 2048  ;;  %s1269_s21 = scalar_lea.hbm %s1791_s4, 4096 }
  0x8d   : > { %p1265_p11 = scmp.ne.s32.totalorder %s1561_s19, %s1264_s13  ;;  %p1270_p1 = scmp.lt.u32.totalorder %s1561_s19, %s1791_s4 }
  0x8e   : > { %p1271_p12 = scmp.lt.u32.totalorder %s1269_s21, %s1264_s13  ;;  %p1273_p6 = scmp.lt.u32.totalorder %s1264_s13, %s1561_s19 }
  0x8f   : > { %p1267_p10 = pnand %p1265_p11, %p1529_p9 }
  0x90   : > { %p1272_p2 = por %p1271_p12, %p1270_p1 }
  0x91   : > { %p1268_p0 = pneg %p1267_p10 }
  0x92   : > { %p1274_p7 = por %p1273_p6, %p1272_p2 }
  0x94   : > { %p1275_p3 = pnand %p1274_p7, %p1268_p0 }
  0x96   : > { %1278 = shalt.err (!%p1275_p3)
}
  0x97   : > { %s1279_s10 = scalar_lea.vmem %s1613_s16, 2048  ;;  %s1378_s29 = smov [#allocation11]  }
  0x98   : > { %p1280_p4 = scmp.ne.s32.totalorder %s1613_s16, %s1279_s10  ;;  %s1284_s20 = sshll.u32 %s1378_s29, 4  ;;  %s1285_s20 = int_to_ptr.vmem [resolvable:$false] %s1284_s20 }
  0x99   : > { %s1286_s15 = scalar_lea.vmem %s1285_s20, 4096  ;;  %p1287_p11 = scmp.lt.s32.totalorder %s1613_s16, %s1285_s20 }
  0x9a   : > { %p1282_p13 = pnand %p1280_p4, %p1529_p9  ;;  %p1288_p10 = scmp.lt.s32.totalorder %s1286_s15, %s1279_s10 }
  0x9c   : > { %p1283_p5 = pneg %p1282_p13  ;;  %p1289_p1 = por %p1288_p10, %p1287_p11 }
  0x9e   : > { %p1290_p12 = pnand %p1289_p1, %p1283_p5 }
  0xa0   : > { %1293 = shalt.err (!%p1290_p12)
}
  0xa1   : > { %1101 = dma.hbm_to_vmem [thread:$0]  (!%p1818_p8), %s1561_s19, 2048, %s1613_s16, %s1523_s27, %s1823_s18, %s1823_s18, %s1822_s28  }
  0xa2   : > { %p1827_p9 = scmp.ne.s32.totalorder %s1813_s8, 0 }
  0xa3   : > { %s323_s9 = sand.u32 (!%p1827_p9), 1, %s1362_s22   ;;  %p1828_p0 = scmp.ne.s32.totalorder (!%p1827_p9), %s1812_s7, 0 }
  0xa4   : > { %321 = sbr.rel (%p1827_p9) target bundleno = 668 (0x29c), region = 44  ;;  %s864_s17 = sshll.u32 (!%p1827_p9), %s323_s9, 4 }
  0xa5   : > { %s324_s24 = scalar_lea.sflag (!%p1827_p9), [#allocation4], %s323_s9  ;;  %s1676_s0 = scalar_lea.vmem (!%p1827_p9), [#allocation3], %s864_s17 }
  0xab   : > { %1337 = dma.done.wait (%p1828_p0), %s324_s24, 256  }
  0xac   : > { %1339 = vsyncadd (%p1828_p0), %s324_s24, 4294967040  ;;  %s332_s14 = sand.u32 1, %s1437_s25   ;;  %s336_s27 = scalar_lea.vmem [#allocation6], %s864_s17 }
  0xad   : > { %s333_s12 = scalar_lea.sflag [#allocation7], %s332_s14 }
  0xae   : > { %1341 = dma.done.wait (%p1828_p0), %s333_s12, 256  }
  0xaf   : > { %1343 = vsyncadd (%p1828_p0), %s333_s12, 4294967040  ;;  %p1829_p8 = scmp.eq.s32.totalorder %s1437_s25, 0 }
  0xb1   : > { %1345 = dma.done.wait (%p1829_p8), [#allocation7], 256   ;;  %p1830_p2 = pmov %p1829_p8 }
  0xb2   : > { %s867_s8 = sshll.u32 %s323_s9, 7  ;;  %s346_s19 = scalar_lea.sflag [#allocation10], %s332_s14 }
  0xb3   : > { %1347 = vsyncadd (%p1830_p2), [#allocation7], 4294967040  ;;  %s1691_s28 = scalar_lea.vmem [#allocation9], %s867_s8 }
  0xb4   : > { %1349 = dma.done.wait (%p1828_p0), %s346_s19, 4096  }
  0xb5   : > { %1351 = vsyncadd (%p1828_p0), %s346_s19, 4294963200  ;;  %p400_p6 = scmp.lt.s32.totalorder %s1437_s25, 1  ;;  %s1705_s3 = scalar_lea.vmem [#allocation11], %s867_s8 }
  0xb6   : > { %p1831_p7 = scmp.ne.s32.totalorder %s1437_s25, 0 }
  0xb7   : > { %s1699_s18 = scalar_select %p400_p6, %s1437_s25, 1 }
  0xb8   : > { %406 = sbr.rel (%p1831_p7) target bundleno = 191 (0xbf), region = 68  ;;  %v1379_v0 = vmov (!%p1831_p7), 0.0  }
  0xb9   : > { %s402_s13 = scalar_lea.vmem %s1792_s5, %s1699_s18  ;;  %407 = vst [vmem:[#allocation2] sm:$0xff] (!%p1831_p7), %v1379_v0  ;;  %408 = vst [vmem:[#allocation2 + $0x8] sm:$0xff] (!%p1831_p7), %v1379_v0 }
  0xbf PF: > { %v411_v1 = vld [vmem:[%s336_s27] sm:$0xff]  ;;  %v412_v2 = vld [vmem:[%s336_s27 + $0x8] sm:$0xff]  ;;  %vm413_vm0 = vcmask 130048   ;;  %p873_p3 = scmp.ne.s32.totalorder %s1437_s25, 1 }
  0xc0   : > { %v409_v3 = vld [vmem:[%s1676_s0] sm:$0xff]  ;;  %v999_v4 = vpack.c.bf16 %v412_v2, %v411_v1  ;;  %v500_v6 = vld [vmem:[%s1691_s28 + $0x8] sm:$0xff]  ;;  %v502_v12 = vld [vmem:[%s1691_s28 + $0x18] sm:$0xff] }
  0xc1   : > { %926 = vmatprep.mubr.msk.f32.mxu0 %vm413_vm0, %v409_v3  ;;  %v499_v5 = vld [vmem:[%s1691_s28] sm:$0xff]  ;;  %v516_v9 = vld [vmem:[%s1705_s3 + $0x8] sm:$0xff]  ;;  %v501_v10 = vld [vmem:[%s1691_s28 + $0x10] sm:$0xff] }
  0xc2   : > { %v1035_v7 = vpack.c.bf16 %v500_v6, %v499_v5  ;;  %v515_v8 = vld [vmem:[%s1705_s3] sm:$0xff]  ;;  %1000 = vmatprep.subr.bf16.mxu0 %v999_v4  ;;  %v517_v13 = vld [vmem:[%s1705_s3 + $0x10] sm:$0xff]  ;;  %v518_v14 = vld [vmem:[%s1705_s3 + $0x18] sm:$0xff]  ;;  %v1039_v16 = vpack.c.bf16 %v502_v12, %v501_v10 }
  0xc3   : > { %v1003_v11 = vpack.c.bf16 %v516_v9, %v515_v8  ;;  %1002 = vmatpush3.bf16.msra.mxu0 %v999_v4  ;;  %v410_v15 = vld [vmem:[%s1676_s0 + $0x8] sm:$0xff]  ;;  %v503_v17 = vld [vmem:[%s1691_s28 + $0x20] sm:$0xff]  ;;  %v1007_v19 = vpack.c.bf16 %v518_v14, %v517_v13  ;;  %v505_v23 = vld [vmem:[%s1691_s28 + $0x30] sm:$0xff] }
  0xc4   : > { %1036 = vmatprep.subr.bf16.mxu1 %v1035_v7  ;;  %v504_v18 = vld [vmem:[%s1691_s28 + $0x28] sm:$0xff]  ;;  %v519_v21 = vld [vmem:[%s1705_s3 + $0x20] sm:$0xff]  ;;  %v506_v24 = vld [vmem:[%s1691_s28 + $0x38] sm:$0xff] }
  0xc5   : > { %1004 = vmatprep.subr.bf16.mxu0 %v1003_v11  ;;  %1038 = vmatpush3.bf16.msra.mxu1 %v1035_v7  ;;  %v1043_v20 = vpack.c.bf16 %v504_v18, %v503_v17  ;;  %v520_v22 = vld [vmem:[%s1705_s3 + $0x28] sm:$0xff]  ;;  %v1047_v26 = vpack.c.bf16 %v506_v24, %v505_v23  ;;  %v521_v27 = vld [vmem:[%s1705_s3 + $0x30] sm:$0xff]  ;;  %v522_v28 = vld [vmem:[%s1705_s3 + $0x38] sm:$0xff] }
  0xc6   : > { %1040 = vmatprep.subr.bf16.mxu1 %v1039_v16  ;;  %927 = vmatmul.mubr.msk.f32.vlgmr.msra.gmra.mrb[0].mxu0 %vm413_vm0, %v410_v15  ;;  %v1011_v25 = vpack.c.bf16 %v520_v22, %v519_v21  ;;  %v507_v29 = vld [vmem:[%s1691_s28 + $0x40] sm:$0xff]  ;;  %v508_v30 = vld [vmem:[%s1691_s28 + $0x48] sm:$0xff]  ;;  %v1015_v31 = vpack.c.bf16 %v522_v28, %v521_v27  ;;  %v509_v35 = vld [vmem:[%s1691_s28 + $0x50] sm:$0xff] }
  0xc7   : > { %1006 = vmatpush3.bf16.msra.mxu0 %v1003_v11  ;;  %v1051_v32 = vpack.c.bf16 %v508_v30, %v507_v29  ;;  %v523_v33 = vld [vmem:[%s1705_s3 + $0x40] sm:$0xff]  ;;  %v524_v34 = vld [vmem:[%s1705_s3 + $0x48] sm:$0xff]  ;;  %v510_v36 = vld [vmem:[%s1691_s28 + $0x58] sm:$0xff] }
  0xc8   : > { %1008 = vmatprep.subr.bf16.mxu0 %v1007_v19  ;;  %v1019_v37 = vpack.c.bf16 %v524_v34, %v523_v33  ;;  %v1055_v38 = vpack.c.bf16 %v510_v36, %v509_v35  ;;  %v525_v39 = vld [vmem:[%s1705_s3 + $0x50] sm:$0xff]  ;;  %v526_v40 = vld [vmem:[%s1705_s3 + $0x58] sm:$0xff]  ;;  %v511_v41 = vld [vmem:[%s1691_s28 + $0x60] sm:$0xff] }
  0xc9   : > { %1042 = vmatpush3.bf16.msra.mxu1 %v1039_v16  ;;  %v512_v42 = vld [vmem:[%s1691_s28 + $0x68] sm:$0xff]  ;;  %v1023_v43 = vpack.c.bf16 %v526_v40, %v525_v39  ;;  %v527_v45 = vld [vmem:[%s1705_s3 + $0x60] sm:$0xff]  ;;  %v513_v47 = vld [vmem:[%s1691_s28 + $0x70] sm:$0xff] }
  0xca   : > { %1044 = vmatprep.subr.bf16.mxu1 %v1043_v20  ;;  %v1059_v44 = vpack.c.bf16 %v512_v42, %v511_v41  ;;  %v528_v46 = vld [vmem:[%s1705_s3 + $0x68] sm:$0xff]  ;;  %v514_v48 = vld [vmem:[%s1691_s28 + $0x78] sm:$0xff]  ;;  %v529_v51 = vld [vmem:[%s1705_s3 + $0x70] sm:$0xff] }
  0xcb   : > { %1010 = vmatpush3.bf16.msra.mxu0 %v1007_v19  ;;  %v1027_v49 = vpack.c.bf16 %v528_v46, %v527_v45  ;;  %v1063_v50 = vpack.c.bf16 %v514_v48, %v513_v47  ;;  %v530_v52 = vld [vmem:[%s1705_s3 + $0x78] sm:$0xff]  ;;  %v497_v54 = vld [vmem:[#allocation8] sm:$0xff]  ;;  %v872_v61 = vld [vmem:[%s402_s13] ss:$0 sm:$0xff] }
  0xcc   : > { %1012 = vmatprep.subr.bf16.mxu0 %v1011_v25  ;;  %v1031_v53 = vpack.c.bf16 %v530_v52, %v529_v51  ;;  %996 = vmatprep.mubr.f32.mxu1 %v497_v54  ;;  %v498_v55 = vld [vmem:[#allocation8 + $0x8] sm:$0xff]  ;;  %v496_v0 = vld [vmem:[#allocation2 + $0x8] sm:$0xff]  ;;  %v495_v3 = vld [vmem:[#allocation2] sm:$0xff] }
  0xcd   : > { %1046 = vmatpush3.bf16.msra.mxu1 %v1043_v20 }
  0xce   : > { %1048 = vmatprep.subr.bf16.mxu1 %v1047_v26 }
  0xcf   : > { %1014 = vmatpush3.bf16.msra.mxu0 %v1011_v25 }
  0xd0   : > { %1016 = vmatprep.subr.bf16.mxu0 %v1015_v31 }
  0xd1   : > { %1050 = vmatpush3.bf16.msra.mxu1 %v1047_v26 }
  0xd2   : > { %1052 = vmatprep.subr.bf16.mxu1 %v1051_v32 }
  0xd3   : > { %1018 = vmatpush3.bf16.msra.mxu0 %v1015_v31 }
  0xd4   : > { %1020 = vmatprep.subr.bf16.mxu0 %v1019_v37 }
  0xd5   : > { %1054 = vmatpush3.bf16.msra.mxu1 %v1051_v32 }
  0xd6   : > { %1056 = vmatprep.subr.bf16.mxu1 %v1055_v38 }
  0xd7   : > { %1022 = vmatpush3.bf16.msra.mxu0 %v1019_v37 }
  0xd8   : > { %1024 = vmatprep.subr.bf16.mxu0 %v1023_v43 }
  0xd9   : > { %1058 = vmatpush3.bf16.msra.mxu1 %v1055_v38 }
  0xda   : > { %1060 = vmatprep.subr.bf16.mxu1 %v1059_v44 }
  0xdb   : > { %1026 = vmatpush3.bf16.msra.mxu0 %v1023_v43 }
  0xdc   : > { %1028 = vmatprep.subr.bf16.mxu0 %v1027_v49 }
  0xdd   : > { %1062 = vmatpush3.bf16.msra.mxu1 %v1059_v44 }
  0xde   : > { %1064 = vmatprep.subr.bf16.mxu1 %v1063_v50 }
  0xdf   : > { %1030 = vmatpush3.bf16.msra.mxu0 %v1027_v49 }
  0xe0   : > { %1032 = vmatprep.subr.bf16.mxu0 %v1031_v53 }
  0xe1   : > { %1066 = vmatpush3.bf16.msra.mxu1 %v1063_v50 }
  0xe3   : > { %1034 = vmatpush3.bf16.msra.mxu0 %v1031_v53 }
  0xe4   : > { %997 = vmatmul.mubr.f32.vlgmr.msra.gmra.mrb[0].mxu1 %v498_v55 }
 0x199   : > { %v928_v56 = vpop.f32.mrb[0].mxu0 }
 0x19a   : > { %v486_v57 = vpop.f32.mrb[1].mxu0 }
 0x19b   : > { %961 = vmatprep.mubr.f32.mxu0 %v486_v57 }
 0x19c   : > { %962 = vmatmul.mubr.f32.vlgmr.msra.gmra.mrb[2].mxu0 %v928_v56 }
 0x1b7   : > { %v998_v58 = vpop.f32.mrb[0].mxu1 }
 0x1b8   : > { %v672_v59 = vpop.f32.mrb[1].mxu1 }
 0x26f   : > { %v963_v60 = vpop.f32.mrb[2].mxu0 }
 0x270   : > { %v678_v62 = vadd.f32 %v998_v58, %v963_v60  ;;  %v597_v63 = vpop.f32.mrb[3].mxu0 }
 0x271   : > { %v673_v1 = vadd.f32 %v672_v59, %v597_v63  ;;  %697 = sbr.rel (%p873_p3) target bundleno = 642 (0x282), region = 72 }
 0x272   : > { %v689_v2 = vadd.f32 %v872_v61, %v678_v62 }
 0x273   : > { %v688_v4 = vadd.f32 %v872_v61, %v673_v1 }
 0x274   : > { %v691_v5 = vadd.f32 %v689_v2, %v496_v0 }
 0x275   : > { %v690_v6 = vadd.f32 %v688_v4, %v495_v3 }
 0x276   : > { %693 = vst [vmem:[#allocation2 + $0x8] sm:$0xff] %v691_v5 }
 0x277   : > { %692 = vst [vmem:[#allocation2] sm:$0xff] %v690_v6 }
 0x27d   : > { %v699_v8 = vld [vmem:[#allocation2 + $0x8] sm:$0xff] }
 0x27e   : > { %v698_v7 = vld [vmem:[#allocation2] sm:$0xff]  ;;  %v701_v10 = vmax.f32 %v699_v8, 0.0 }
 0x27f   : > { %v700_v9 = vmax.f32 %v698_v7, 0.0 }
 0x280   : > { %703 = vst [vmem:[#allocation12 + $0x8] sm:$0xff] %v701_v10 }
 0x281   : > { %702 = vst [vmem:[#allocation12] sm:$0xff] %v700_v9 }
 0x282 PF: > { %p1105_p4 = scmp.eq.s32.totalorder %s1437_s25, 1  ;;  %s1380_s21 = smov [#allocation12]  }
 0x283   : > { %s710_s30 = sshll.u32 %s1380_s21, 4  ;;  %s711_s30 = int_to_ptr.vmem [resolvable:$true] %s710_s30 }
 0x284   : > { %s1294_s23 = scalar_lea.vmem %s711_s30, 256  ;;  %p1301_p10 = scmp.lt.s32.totalorder %s711_s30, %s711_s30 }
 0x285   : > { %p1295_p13 = scmp.ne.s32.totalorder %s711_s30, %s1294_s23  ;;  %p1302_p1 = scmp.lt.s32.totalorder %s1294_s23, %s1294_s23 }
 0x287   : > { %p1296_p5 = pnand %p1295_p13, %p1105_p4  ;;  %p1303_p12 = por %p1302_p1, %p1301_p10 }
 0x289   : > { %p1297_p11 = pneg %p1296_p5 }
 0x28b   : > { %p1304_p9 = pnand %p1303_p12, %p1297_p11 }
 0x28d   : > { %1307 = shalt.err (!%p1304_p9)
}
 0x28e   : > { %s1308_s20 = scalar_lea.hbm %s1793_s6, 256 }
 0x28f   : > { %p1309_p0 = scmp.ne.s32.totalorder %s1793_s6, %s1308_s20  ;;  %p1314_p6 = scmp.lt.u32.totalorder %s1308_s20, %s1793_s6 }
 0x291   : > { %p1310_p8 = pnand %p1309_p0, %p1105_p4 }
 0x293   : > { %p1311_p2 = pneg %p1310_p8 }
 0x295   : > { %p1316_p7 = pnand %p1314_p6, %p1311_p2 }
 0x297   : > { %1319 = shalt.err (!%p1316_p7)
}
 0x298   : > { %s1381_s0 = smov 128   ;;  %s1382_s14 = smov 8  }
 0x299   : > { %1082 = dma.vmem_to_hbm [thread:$0]  (%p1105_p4), %s711_s30, 256, %s1793_s6, [#allocation5], %s1381_s0, %s1381_s0, %s1382_s14  }
 0x29a   : > { %1353 = dma.done.wait (%p1105_p4), [#allocation5], 256  }
 0x29b   : > { %1355 = vsyncadd (%p1105_p4), [#allocation5], 4294967040 }
 0x29c PF: > { %s1832_s8 = sld [smem:[#allocation18_spill]]  ;;  %s1833_s23 = sld [smem:[#allocation19_spill]] }
 0x29d   : > { %p23_p3 = scmp.ge.s32.totalorder %s1440_s26, 4   ;;  %s1834_s21 = smov %s1362_s22 }
 0x29e   : > { %s1836_s24 = smov %s1440_s26 }
 0x29f   :  { %25 = sbr.rel (!%p23_p3) target bundleno = 12 (0xc), region = 133 }
 0x2a2   : > { %s1835_s22 = smov %s1832_s8 }
 0x2a6   :  { %726 = vsyncpa [#allocation4], 1 }
 0x2a7   :  { %728 = vsyncpa [#allocation4 + $0x1], 1 }
 0x2a8   :  { %729 = vsyncpa [#allocation7], 1 }
 0x2a9   :  { %731 = vsyncpa [#allocation7 + $0x1], 1 }
 0x2aa   :  { %732 = vsyncpa [#allocation10], 1 }
 0x2ab   :  { %734 = vsyncpa [#allocation10 + $0x1], 1 }
 0x2ac   :  { %735 = vsyncpa [#allocation5], 1 }
 0x2ad   :  { %737 = vsyncpa [#allocation5 + $0x1], 1 }

</bundles_post_ra>
